<compile_context>
chip_gen: v7x
topology: tpu7x:2x2x1
jax: 0.10.0
libtpu: 0.0.40
codegen_flags: <defaults>
</compile_context>

<pallas_src>
import jax
import jax.numpy as jnp
import numpy as np
from jax import lax
from jax.experimental import pallas as pl
from jax.experimental.pallas import tpu as pltpu


def _cafm_kernel(x_ref, y_ref, xmean_ref, ymean_ref, wq_ref, wk_ref, wv_ref,
                 gamma_ref, out_ref, qc_sc, m_sc, l_sc, acc_sc):
    ki = pl.program_id(2)

    @pl.when(ki == 0)
    def _init():
        # Centered query projection for this q-tile (conv bias cancels with
        # the spatial-mean subtraction); cached across the key-tile loop.
        xc = x_ref[0] - xmean_ref[0]                                      # (C, TQ)
        qc_sc[...] = jnp.dot(wq_ref[...], xc,
                             preferred_element_type=jnp.float32)
        m_sc[...] = jnp.full(m_sc.shape, -jnp.inf, m_sc.dtype)
        l_sc[...] = jnp.zeros(l_sc.shape, l_sc.dtype)
        acc_sc[...] = jnp.zeros(acc_sc.shape, acc_sc.dtype)

    # Key / value projections for the current key tile (centered key only).
    yc = y_ref[0] - ymean_ref[0]                                          # (C, TK)
    kc = jnp.dot(wk_ref[...], yc, preferred_element_type=jnp.float32)     # (C, TK)
    v = jnp.dot(wv_ref[...], y_ref[0],
                preferred_element_type=jnp.float32)                       # (C, TK)

    # sim^T tile: (TK, TQ) = kc^T @ qc  -- queries stay lane-dense.
    sim_t = lax.dot_general(kc, qc_sc[...], (((0,), (0,)), ((), ())),
                            preferred_element_type=jnp.float32)

    # Online softmax update (stats are per-query, shape (1, TQ)).
    m_prev = m_sc[...]
    m_new = jnp.maximum(m_prev, jnp.max(sim_t, axis=0, keepdims=True))
    alpha = jnp.exp(m_prev - m_new)
    p_t = jnp.exp(sim_t - m_new)                                          # (TK, TQ)
    l_sc[...] = alpha * l_sc[...] + jnp.sum(p_t, axis=0, keepdims=True)
    acc_sc[...] = alpha * acc_sc[...] + jnp.dot(
        v, p_t, preferred_element_type=jnp.float32)                       # (C, TQ)
    m_sc[...] = m_new

    @pl.when(ki == pl.num_programs(2) - 1)
    def _finalize():
        # Deferred normalization with gamma folded into the same scale.
        scale = gamma_ref[0] * pl.reciprocal(l_sc[...], approx=True)      # (1, TQ)
        out_ref[0] = (acc_sc[...] * scale).astype(out_ref.dtype)


def _pick_tile(n):
    """Largest tile in {512, 256, 128} dividing n with >= 2 tiles."""
    for t in (512, 256, 128):
        if n % t == 0 and n // t >= 2:
            return t
    # Small or ragged N: fall back to a single full-axis tile (correct, but
    # unoptimized if N is large and not a multiple of 128).
    # TODO(synk): add masked ragged-tile support for N not divisible by 128.
    return n


def cafm_forward(x, y, params):
    """x, y: (B, C, H, W) float32.  Returns (B, C, H, W) float32."""
    B, C, H, W = x.shape
    N = H * W

    # NCHW -> (B, C, N): pure reshape, no transpose.
    x_cn = x.reshape(B, C, N)
    y_cn = y.reshape(B, C, N)
    # Per-batch, per-channel spatial means (cheap fused reduce in XLA).
    x_mean = jnp.mean(x_cn, axis=2, keepdims=True)   # (B, C, 1)
    y_mean = jnp.mean(y_cn, axis=2, keepdims=True)   # (B, C, 1)

    tq = _pick_tile(N)
    tk = _pick_tile(N)
    grid = (B, N // tq, N // tk)

    out_cn = pl.pallas_call(
        _cafm_kernel,
        out_shape=jax.ShapeDtypeStruct((B, C, N), jnp.float32),
        grid=grid,
        in_specs=[
            pl.BlockSpec((1, C, tq), lambda b, qi, ki: (b, 0, qi)),   # x tile
            pl.BlockSpec((1, C, tk), lambda b, qi, ki: (b, 0, ki)),   # y tile
            pl.BlockSpec((1, C, 1), lambda b, qi, ki: (b, 0, 0)),     # x mean
            pl.BlockSpec((1, C, 1), lambda b, qi, ki: (b, 0, 0)),     # y mean
            pl.BlockSpec((C, C), lambda b, qi, ki: (0, 0)),           # Wq
            pl.BlockSpec((C, C), lambda b, qi, ki: (0, 0)),           # Wk
            pl.BlockSpec((C, C), lambda b, qi, ki: (0, 0)),           # Wv
            pl.BlockSpec(memory_space=pltpu.MemorySpace.SMEM),        # gamma
        ],
        out_specs=pl.BlockSpec((1, C, tq), lambda b, qi, ki: (b, 0, qi)),
        scratch_shapes=[
            pltpu.VMEM((C, tq), jnp.float32),   # cached centered q projection
            pltpu.VMEM((1, tq), jnp.float32),   # running max m
            pltpu.VMEM((1, tq), jnp.float32),   # running sum l
            pltpu.VMEM((C, tq), jnp.float32),   # output accumulator
        ],
        compiler_params=pltpu.CompilerParams(
            dimension_semantics=("parallel", "parallel", "arbitrary")),
    )(x_cn, y_cn, x_mean, y_mean,
      params["wq"], params["wk"], params["wv"], params["gamma"])

    # (B, C, N) -> NCHW: pure reshape, no transpose.
    return out_cn.reshape(B, C, H, W)


def cafm_reference(x, y, params):
    """Pure-JAX reference mirroring the PyTorch forward exactly (with biases)."""
    B, C, H, W = x.shape
    N = H * W

    def conv1x1(inp, w, b=None):
        out = jnp.einsum("bchw,oc->bohw", inp, w)
        if b is not None:
            out = out + b[None, :, None, None]
        return out

    value = conv1x1(y, params["wv"]).reshape(B, C, N)
    query = conv1x1(x, params["wq"], params["bq"]).reshape(B, C, N)
    key = conv1x1(y, params["wk"], params["bk"]).reshape(B, C, N)
    key = key - key.mean(axis=2, keepdims=True)
    query = query - query.mean(axis=2, keepdims=True)
    sim = jnp.einsum("bcn,bcm->bnm", query, key)            # bmm(q^T, k)
    sim = jax.nn.softmax(sim, axis=2)
    out = jnp.einsum("bnm,bcm->bnc", sim, value)            # bmm(sim, v^T)
    out = jnp.transpose(out, (0, 2, 1)).reshape(B, C, H, W)
    return params["gamma"][0] * out


def init_params(key, channels):
    k1, k2, k3, k4, k5 = jax.random.split(key, 5)
    scale = 1.0 / np.sqrt(channels)
    return {
        "wv": jax.random.normal(k1, (channels, channels), jnp.float32) * scale,
        "wq": jax.random.normal(k2, (channels, channels), jnp.float32) * scale,
        "bq": jax.random.normal(k3, (channels,), jnp.float32) * scale,
        "wk": jax.random.normal(k4, (channels, channels), jnp.float32) * scale,
        "bk": jax.random.normal(k5, (channels,), jnp.float32) * scale,
        # Module initializes gamma to 0 (output would be all-zero); use a
        # deterministic nonzero value so the test exercises the full path.
        "gamma": jnp.array([0.5], jnp.float32),
    }


if __name__ == "__main__":
    B, C, H, W = 2, 4, 16, 16        # N = 256 -> TQ = TK = 128, grid (2, 2, 2)
    key = jax.random.PRNGKey(0)
    kx, ky, kp = jax.random.split(key, 3)
    x = jax.random.normal(kx, (B, C, H, W), jnp.float32)
    y = jax.random.normal(ky, (B, C, H, W), jnp.float32)
    params = init_params(kp, C)

    out = jax.block_until_ready(cafm_forward(x, y, params))
    ref = jax.block_until_ready(cafm_reference(x, y, params))

    np.testing.assert_allclose(np.asarray(out), np.asarray(ref),
                               rtol=2e-3, atol=2e-3)
    print("KERNEL_OK")
</pallas_src>

<mosaic_0001>
module attributes {stable_mosaic.version = 11 : i64} {
  func.func @_cafm_kernel(%arg0: i32, %arg1: i32, %arg2: i32, %arg3: memref<1x4x128xf32, #tpu.memory_space<vmem>>, %arg4: memref<1x4x128xf32, #tpu.memory_space<vmem>>, %arg5: memref<1x4x1xf32, #tpu.memory_space<vmem>>, %arg6: memref<1x4x1xf32, #tpu.memory_space<vmem>>, %arg7: memref<4x4xf32, #tpu.memory_space<vmem>>, %arg8: memref<4x4xf32, #tpu.memory_space<vmem>>, %arg9: memref<4x4xf32, #tpu.memory_space<vmem>>, %arg10: memref<1xf32, #tpu.memory_space<smem>>, %arg11: memref<1x4x128xf32, #tpu.memory_space<vmem>>, %arg12: memref<4x128xf32, #tpu.memory_space<vmem>>, %arg13: memref<1x128xf32, #tpu.memory_space<vmem>>, %arg14: memref<1x128xf32, #tpu.memory_space<vmem>>, %arg15: memref<4x128xf32, #tpu.memory_space<vmem>>) attributes {dimension_semantics = [#tpu.dimension_semantics<parallel>, #tpu.dimension_semantics<parallel>, #tpu.dimension_semantics<arbitrary>], iteration_bounds = array<i64: 2, 2, 2>, scalar_prefetch = 0 : i64, scratch_operands = 4 : i64, tpu.core_type = #tpu.core_type<tc>, window_params = [{transform_indices = @transform_0, window_bounds = array<i64: 1, 4, 128>}, {transform_indices = @transform_1, window_bounds = array<i64: 1, 4, 128>}, {transform_indices = @transform_2, window_bounds = array<i64: 1, 4, 1>}, {transform_indices = @transform_3, window_bounds = array<i64: 1, 4, 1>}, {pipeline_mode = #tpu.pipeline_mode<synchronous>, transform_indices = @transform_4, window_bounds = array<i64: 4, 4>}, {pipeline_mode = #tpu.pipeline_mode<synchronous>, transform_indices = @transform_5, window_bounds = array<i64: 4, 4>}, {pipeline_mode = #tpu.pipeline_mode<synchronous>, transform_indices = @transform_6, window_bounds = array<i64: 4, 4>}, {transform_indices = @transform_7, window_bounds = array<i64: 1>}, {transform_indices = @transform_8, window_bounds = array<i64: 1, 4, 128>}]} {
    %c0_i32 = arith.constant 0 : i32
    %0 = arith.cmpi eq, %arg2, %c0_i32 : i32
    %1 = arith.extui %0 : i1 to i32
    %c0_i32_0 = arith.constant 0 : i32
    %2 = arith.cmpi ne, %1, %c0_i32_0 : i32
    scf.if %2 {
      %c0_33 = arith.constant 0 : index
      %c0_34 = arith.constant 0 : index
      %c0_35 = arith.constant 0 : index
      %42 = vector.load %arg3[%c0_33, %c0_34, %c0_35] : memref<1x4x128xf32, #tpu.memory_space<vmem>>, vector<1x4x128xf32>
      %43 = vector.shape_cast %42 : vector<1x4x128xf32> to vector<4x128xf32>
      %c0_36 = arith.constant 0 : index
      %c0_37 = arith.constant 0 : index
      %c0_38 = arith.constant 0 : index
      %44 = vector.load %arg5[%c0_36, %c0_37, %c0_38] : memref<1x4x1xf32, #tpu.memory_space<vmem>>, vector<1x4x1xf32>
      %45 = vector.shape_cast %44 : vector<1x4x1xf32> to vector<4x1xf32>
      %46 = vector.broadcast %45 : vector<4x1xf32> to vector<4x128xf32>
      %47 = arith.subf %43, %46 : vector<4x128xf32>
      %c0_39 = arith.constant 0 : index
      %c0_40 = arith.constant 0 : index
      %48 = vector.load %arg7[%c0_39, %c0_40] : memref<4x4xf32, #tpu.memory_space<vmem>>, vector<4x4xf32>
      %cst_41 = arith.constant dense<0.000000e+00> : vector<4x128xf32>
      %49 = tpu.matmul %48, %47, %cst_41 {dimension_numbers = #tpu.dot_dimension_numbers<[1], [0], [0], [1], [0, 0, 1, 1], [], []>} : vector<4x4xf32>, vector<4x128xf32>, vector<4x128xf32> -> vector<4x128xf32>
      %c0_42 = arith.constant 0 : index
      %c0_43 = arith.constant 0 : index
      %50 = vector.load %arg12[%c0_42, %c0_43] : memref<4x128xf32, #tpu.memory_space<vmem>>, vector<4x128xf32>
      tpu.vector_store %arg12[%c0_42, %c0_43], %49 {strides = array<i32>} : memref<4x128xf32, #tpu.memory_space<vmem>>, vector<4x128xf32>,
      %cst_44 = arith.constant 0xFF800000 : f32
      %51 = vector.broadcast %cst_44 : f32 to vector<1x128xf32>
      %c0_45 = arith.constant 0 : index
      %c0_46 = arith.constant 0 : index
      %52 = vector.load %arg13[%c0_45, %c0_46] : memref<1x128xf32, #tpu.memory_space<vmem>>, vector<1x128xf32>
      tpu.vector_store %arg13[%c0_45, %c0_46], %51 {strides = array<i32>} : memref<1x128xf32, #tpu.memory_space<vmem>>, vector<1x128xf32>,
      %cst_47 = arith.constant 0.000000e+00 : f32
      %53 = vector.broadcast %cst_47 : f32 to vector<1x128xf32>
      %c0_48 = arith.constant 0 : index
      %c0_49 = arith.constant 0 : index
      %54 = vector.load %arg14[%c0_48, %c0_49] : memref<1x128xf32, #tpu.memory_space<vmem>>, vector<1x128xf32>
      tpu.vector_store %arg14[%c0_48, %c0_49], %53 {strides = array<i32>} : memref<1x128xf32, #tpu.memory_space<vmem>>, vector<1x128xf32>,
      %cst_50 = arith.constant 0.000000e+00 : f32
      %55 = vector.broadcast %cst_50 : f32 to vector<4x128xf32>
      %c0_51 = arith.constant 0 : index
      %c0_52 = arith.constant 0 : index
      %56 = vector.load %arg15[%c0_51, %c0_52] : memref<4x128xf32, #tpu.memory_space<vmem>>, vector<4x128xf32>
      tpu.vector_store %arg15[%c0_51, %c0_52], %55 {strides = array<i32>} : memref<4x128xf32, #tpu.memory_space<vmem>>, vector<4x128xf32>,
    } else {
    }
    %c0 = arith.constant 0 : index
    %c0_1 = arith.constant 0 : index
    %c0_2 = arith.constant 0 : index
    %3 = vector.load %arg4[%c0, %c0_1, %c0_2] : memref<1x4x128xf32, #tpu.memory_space<vmem>>, vector<1x4x128xf32>
    %4 = vector.shape_cast %3 : vector<1x4x128xf32> to vector<4x128xf32>
    %c0_3 = arith.constant 0 : index
    %c0_4 = arith.constant 0 : index
    %c0_5 = arith.constant 0 : index
    %5 = vector.load %arg6[%c0_3, %c0_4, %c0_5] : memref<1x4x1xf32, #tpu.memory_space<vmem>>, vector<1x4x1xf32>
    %6 = vector.shape_cast %5 : vector<1x4x1xf32> to vector<4x1xf32>
    %7 = vector.broadcast %6 : vector<4x1xf32> to vector<4x128xf32>
    %8 = arith.subf %4, %7 : vector<4x128xf32>
    %c0_6 = arith.constant 0 : index
    %c0_7 = arith.constant 0 : index
    %9 = vector.load %arg8[%c0_6, %c0_7] : memref<4x4xf32, #tpu.memory_space<vmem>>, vector<4x4xf32>
    %cst = arith.constant dense<0.000000e+00> : vector<4x128xf32>
    %10 = tpu.matmul %9, %8, %cst {dimension_numbers = #tpu.dot_dimension_numbers<[1], [0], [0], [1], [0, 0, 1, 1], [], []>} : vector<4x4xf32>, vector<4x128xf32>, vector<4x128xf32> -> vector<4x128xf32>
    %c0_8 = arith.constant 0 : index
    %c0_9 = arith.constant 0 : index
    %11 = vector.load %arg9[%c0_8, %c0_9] : memref<4x4xf32, #tpu.memory_space<vmem>>, vector<4x4xf32>
    %c0_10 = arith.constant 0 : index
    %c0_11 = arith.constant 0 : index
    %c0_12 = arith.constant 0 : index
    %12 = vector.load %arg4[%c0_10, %c0_11, %c0_12] : memref<1x4x128xf32, #tpu.memory_space<vmem>>, vector<1x4x128xf32>
    %13 = vector.shape_cast %12 : vector<1x4x128xf32> to vector<4x128xf32>
    %cst_13 = arith.constant dense<0.000000e+00> : vector<4x128xf32>
    %14 = tpu.matmul %11, %13, %cst_13 {dimension_numbers = #tpu.dot_dimension_numbers<[1], [0], [0], [1], [0, 0, 1, 1], [], []>} : vector<4x4xf32>, vector<4x128xf32>, vector<4x128xf32> -> vector<4x128xf32>
    %c0_14 = arith.constant 0 : index
    %c0_15 = arith.constant 0 : index
    %15 = vector.load %arg12[%c0_14, %c0_15] : memref<4x128xf32, #tpu.memory_space<vmem>>, vector<4x128xf32>
    %cst_16 = arith.constant dense<0.000000e+00> : vector<128x128xf32>
    %16 = tpu.matmul %10, %15, %cst_16 {dimension_numbers = #tpu.dot_dimension_numbers<[0], [0], [1], [1], [0, 1, 1, 1], [], []>} : vector<4x128xf32>, vector<4x128xf32>, vector<128x128xf32> -> vector<128x128xf32>
    %c0_17 = arith.constant 0 : index
    %c0_18 = arith.constant 0 : index
    %17 = vector.load %arg13[%c0_17, %c0_18] : memref<1x128xf32, #tpu.memory_space<vmem>>, vector<1x128xf32>
    %cst_19 = arith.constant dense<0xFF800000> : vector<128xf32>
    %18 = vector.multi_reduction <maximumf>, %16, %cst_19 [0] : vector<128x128xf32> to vector<128xf32>
    %19 = vector.shape_cast %18 : vector<128xf32> to vector<1x128xf32>
    %20 = arith.maximumf %17, %19 : vector<1x128xf32>
    %21 = arith.subf %17, %20 : vector<1x128xf32>
    %22 = math.exp %21 : vector<1x128xf32>
    %23 = vector.broadcast %20 : vector<1x128xf32> to vector<128x128xf32>
    %24 = arith.subf %16, %23 : vector<128x128xf32>
    %25 = math.exp %24 : vector<128x128xf32>
    %c0_20 = arith.constant 0 : index
    %c0_21 = arith.constant 0 : index
    %26 = vector.load %arg14[%c0_20, %c0_21] : memref<1x128xf32, #tpu.memory_space<vmem>>, vector<1x128xf32>
    %27 = arith.mulf %22, %26 : vector<1x128xf32>
    %cst_22 = arith.constant dense<0.000000e+00> : vector<128xf32>
    %28 = vector.multi_reduction <add>, %25, %cst_22 [0] : vector<128x128xf32> to vector<128xf32>
    %29 = vector.shape_cast %28 : vector<128xf32> to vector<1x128xf32>
    %30 = arith.addf %27, %29 : vector<1x128xf32>
    %c0_23 = arith.constant 0 : index
    %c0_24 = arith.constant 0 : index
    %31 = vector.load %arg14[%c0_23, %c0_24] : memref<1x128xf32, #tpu.memory_space<vmem>>, vector<1x128xf32>
    tpu.vector_store %arg14[%c0_23, %c0_24], %30 {strides = array<i32>} : memref<1x128xf32, #tpu.memory_space<vmem>>, vector<1x128xf32>,
    %c0_25 = arith.constant 0 : index
    %c0_26 = arith.constant 0 : index
    %32 = vector.load %arg15[%c0_25, %c0_26] : memref<4x128xf32, #tpu.memory_space<vmem>>, vector<4x128xf32>
    %33 = vector.broadcast %22 : vector<1x128xf32> to vector<4x128xf32>
    %34 = arith.mulf %33, %32 : vector<4x128xf32>
    %cst_27 = arith.constant dense<0.000000e+00> : vector<4x128xf32>
    %35 = tpu.matmul %14, %25, %cst_27 {dimension_numbers = #tpu.dot_dimension_numbers<[1], [0], [0], [1], [0, 0, 1, 1], [], []>} : vector<4x128xf32>, vector<128x128xf32>, vector<4x128xf32> -> vector<4x128xf32>
    %36 = arith.addf %34, %35 : vector<4x128xf32>
    %c0_28 = arith.constant 0 : index
    %c0_29 = arith.constant 0 : index
    %37 = vector.load %arg15[%c0_28, %c0_29] : memref<4x128xf32, #tpu.memory_space<vmem>>, vector<4x128xf32>
    tpu.vector_store %arg15[%c0_28, %c0_29], %36 {strides = array<i32>} : memref<4x128xf32, #tpu.memory_space<vmem>>, vector<4x128xf32>,
    %c0_30 = arith.constant 0 : index
    %c0_31 = arith.constant 0 : index
    %38 = vector.load %arg13[%c0_30, %c0_31] : memref<1x128xf32, #tpu.memory_space<vmem>>, vector<1x128xf32>
    tpu.vector_store %arg13[%c0_30, %c0_31], %20 {strides = array<i32>} : memref<1x128xf32, #tpu.memory_space<vmem>>, vector<1x128xf32>,
    %c1_i32 = arith.constant 1 : i32
    %39 = arith.cmpi eq, %arg2, %c1_i32 : i32
    %40 = arith.extui %39 : i1 to i32
    %c0_i32_32 = arith.constant 0 : i32
    %41 = arith.cmpi ne, %40, %c0_i32_32 : i32
    scf.if %41 {
      %c0_33 = arith.constant 0 : index
      %42 = memref.load %arg10[%c0_33] : memref<1xf32, #tpu.memory_space<smem>>
      %c0_34 = arith.constant 0 : index
      %c0_35 = arith.constant 0 : index
      %43 = vector.load %arg14[%c0_34, %c0_35] : memref<1x128xf32, #tpu.memory_space<vmem>>, vector<1x128xf32>
      %44 = tpu.reciprocal %43 {approx = true} : vector<1x128xf32> -> vector<1x128xf32>
      %45 = vector.broadcast %42 : f32 to vector<1x128xf32>
      %46 = arith.mulf %45, %44 : vector<1x128xf32>
      %c0_36 = arith.constant 0 : index
      %c0_37 = arith.constant 0 : index
      %47 = vector.load %arg15[%c0_36, %c0_37] : memref<4x128xf32, #tpu.memory_space<vmem>>, vector<4x128xf32>
      %48 = vector.broadcast %46 : vector<1x128xf32> to vector<4x128xf32>
      %49 = arith.mulf %47, %48 : vector<4x128xf32>
      %c0_38 = arith.constant 0 : index
      %c0_39 = arith.constant 0 : index
      %c0_40 = arith.constant 0 : index
      %50 = vector.load %arg11[%c0_38, %c0_39, %c0_40] : memref<1x4x128xf32, #tpu.memory_space<vmem>>, vector<1x4x128xf32>
      %51 = vector.shape_cast %50 : vector<1x4x128xf32> to vector<4x128xf32>
      %52 = vector.shape_cast %49 : vector<4x128xf32> to vector<1x4x128xf32>
      tpu.vector_store %arg11[%c0_38, %c0_39, %c0_40], %52 {strides = array<i32>} : memref<1x4x128xf32, #tpu.memory_space<vmem>>, vector<1x4x128xf32>,
    } else {
    }
    return
  }
  func.func @transform_0(%arg0: i32, %arg1: i32, %arg2: i32) -> (i32, i32, i32) {
    %c0_i32 = arith.constant 0 : i32
    %c0_i32_0 = arith.constant 0 : i32
    return %arg0, %c0_i32, %arg1 : i32, i32, i32
  }
  func.func @transform_1(%arg0: i32, %arg1: i32, %arg2: i32) -> (i32, i32, i32) {
    %c0_i32 = arith.constant 0 : i32
    %c0_i32_0 = arith.constant 0 : i32
    return %arg0, %c0_i32, %arg2 : i32, i32, i32
  }
  func.func @transform_2(%arg0: i32, %arg1: i32, %arg2: i32) -> (i32, i32, i32) {
    %c0_i32 = arith.constant 0 : i32
    %c0_i32_0 = arith.constant 0 : i32
    %c0_i32_1 = arith.constant 0 : i32
    return %arg0, %c0_i32, %c0_i32_0 : i32, i32, i32
  }
  func.func @transform_3(%arg0: i32, %arg1: i32, %arg2: i32) -> (i32, i32, i32) {
    %c0_i32 = arith.constant 0 : i32
    %c0_i32_0 = arith.constant 0 : i32
    %c0_i32_1 = arith.constant 0 : i32
    return %arg0, %c0_i32, %c0_i32_0 : i32, i32, i32
  }
  func.func @transform_4(%arg0: i32, %arg1: i32, %arg2: i32) -> (i32, i32) {
    %c0_i32 = arith.constant 0 : i32
    %c0_i32_0 = arith.constant 0 : i32
    %c0_i32_1 = arith.constant 0 : i32
    return %c0_i32, %c0_i32_0 : i32, i32
  }
  func.func @transform_5(%arg0: i32, %arg1: i32, %arg2: i32) -> (i32, i32) {
    %c0_i32 = arith.constant 0 : i32
    %c0_i32_0 = arith.constant 0 : i32
    %c0_i32_1 = arith.constant 0 : i32
    return %c0_i32, %c0_i32_0 : i32, i32
  }
  func.func @transform_6(%arg0: i32, %arg1: i32, %arg2: i32) -> (i32, i32) {
    %c0_i32 = arith.constant 0 : i32
    %c0_i32_0 = arith.constant 0 : i32
    %c0_i32_1 = arith.constant 0 : i32
    return %c0_i32, %c0_i32_0 : i32, i32
  }
  func.func @transform_7(%arg0: i32, %arg1: i32, %arg2: i32) -> i32 {
    %c0_i32 = arith.constant 0 : i32
    %c0_i32_0 = arith.constant 0 : i32
    return %c0_i32 : i32
  }
  func.func @transform_8(%arg0: i32, %arg1: i32, %arg2: i32) -> (i32, i32, i32) {
    %c0_i32 = arith.constant 0 : i32
    %c0_i32_0 = arith.constant 0 : i32
    return %arg0, %c0_i32, %arg1 : i32, i32, i32
  }
}

</mosaic_0001>

<bundles_post_ra>
// kernel: tpu_custom_call.1
= control target key start
LH: loop header
LB: loop body
LE: loop exit
PB: predicated region body
PF: predicated region fallthrough
CT: control target
= control target key end

     0   :  { %s2182_s0 = inlined_call_operand.vmem [shape: f32[2,4,256], index: 0, kind: input, shape index: {}]   ;;  %s2183_s1 = inlined_call_operand.hbm [shape: f32[2,4,256], index: 1, kind: input, shape index: {}]   ;;  %s2184_s2 = inlined_call_operand.vmem [shape: f32[2,4,1], index: 2, kind: input, shape index: {}]   ;;  %s2185_s3 = inlined_call_operand.vmem [shape: f32[2,4,1], index: 3, kind: input, shape index: {}]   ;;  %s2186_s4 = inlined_call_operand.vmem [shape: f32[4,4], index: 4, kind: input, shape index: {}]   ;;  %s2187_s5 = inlined_call_operand.vmem [shape: f32[4,4], index: 5, kind: input, shape index: {}]   ;;  %s2188_s6 = inlined_call_operand.vmem [shape: f32[4,4], index: 6, kind: input, shape index: {}]   ;;  %s2189_s7 = inlined_call_operand.<no memory space> [shape: f32[1], index: 7, kind: input, shape index: {}]   ;;  %s2190_s8 = inlined_call_operand.hbm [shape: f32[2,4,256], index: 8, kind: output, shape index: {}]  }
   0x1   :  { %2203 = sst [smem:[#allocation22_spill]] %s2183_s1 }
   0x2   :  { %2204 = sst [smem:[#allocation23_spill]] %s2186_s4 }
   0x3   :  { %2205 = sst [smem:[#allocation24_spill]] %s2187_s5 }
   0x4   :  { %2206 = sst [smem:[#allocation25_spill]] %s2188_s6 }
   0x5   :  { %2207 = sst [smem:[#allocation26_spill]] %s2190_s8 }
   0x6   :  { %13 = sst [smem:[#allocation6]] %s2189_s7 }
   0x7   :  { %14 = vsyncpa [#allocation8], 0 }
   0x8   :  { %16 = vsyncpa [#allocation8 + $0x1], 0 }
   0x9   :  { %17 = vsyncpa [#allocation9], 0 }
   0xa   :  { %19 = vsyncpa [#allocation9 + $0x1], 0  ;;  %s1829_s29 = smov 0   ;;  %s1831_s30 = smov 0  }
   0xb   :  { %s1833_s9 = smov 0   ;;  %s1835_s10 = smov 0  }
   0xc   :  { %s1837_s11 = smov 0   ;;  %s1839_s12 = smov 0  }
   0xd   :  { %s1841_s13 = smov 0   ;;  %s1843_s14 = smov 0  }
   0xe   :  { %s1845_s7 = smov 0   ;;  %s1847_s15 = smov 0  }
   0xf   :  { %s1849_s16 = smov 0   ;;  %s1851_s17 = smov 0  }
  0x10   :  { %s1853_s18 = smov 0  }
  0x11 LB: > { %2208 = sst [smem:[#allocation13_spill]] %s1721_s29  ;;  %s1253_s19 = sadd.s32 4294967295, %s1769_s18   ;;  %s1769_s18 = sphi %s1853_s18, %s25_s18   ;;  %s1765_s17 = sphi %s1851_s17, %s2243_s17   ;;  %s1761_s16 = sphi %s1849_s16, %s2242_s16   ;;  %s1757_s15 = sphi %s1847_s15, %s2252_s15   ;;  %s1753_s7 = sphi %s1845_s7, %s2240_s7   ;;  %s1749_s14 = sphi %s1843_s14, %s2239_s14   ;;  %s1745_s13 = sphi %s1841_s13, %s2251_s13   ;;  %s1741_s12 = sphi %s1839_s12, %s2250_s12   ;;  %s1737_s11 = sphi %s1837_s11, %s2249_s11   ;;  %s1733_s10 = sphi %s1835_s10, %s2248_s10   ;;  %s1729_s9 = sphi %s1833_s9, %s2247_s9   ;;  %s1725_s30 = sphi %s1831_s30, %s2246_s30   ;;  %s1721_s29 = sphi %s1829_s29, %s2245_s29  }
  0x12   : > { %2209 = sst [smem:[#allocation14_spill]] %s1757_s15  ;;  %s1254_s20 = sadd.s32 4294967294, %s1769_s18  }
  0x13   : > { %2210 = sst [smem:[#allocation15_spill]] %s1761_s16  ;;  %s37_s21 = sadd.s32 1, %s1757_s15 }
  0x14   : > { %2211 = sst [smem:[#allocation16_spill]] %s1765_s17  ;;  %s40_s22 = sadd.s32 1, %s1761_s16 }
  0x15   : > { %p38_p0 = scmp.ge.s32.totalorder %s37_s21, 2  ;;  %s44_s23 = sadd.s32 1, %s1765_s17 }
  0x16   : > { %s81_s24 = sadd.s32 1, %s1741_s12  ;;  %p88_p1 = scmp.ne.s32.totalorder %s1741_s12, %s1737_s11 }
  0x17   : > { %s2254_s21 = smov (%p38_p0, %s37_s21), 0  ;;  %s2256_s22 = smov (!%p38_p0, %s40_s22), %s1761_s16 }
  0x18   : > { %2212 = sst [smem:[#allocation17_spill]] %s2254_s21  ;;  %s77_s25 = ssub.s32 %s1757_s15, %s2254_s21 }
  0x19   : > { %p89_p2 = scmp.eq.s32.totalorder %s1769_s18, 0  ;;  %p42_p3 = scmp.ge.s32.totalorder %s2256_s22, 2 }
  0x1a   : > { %p94_p4 = scmp.ne.s32.totalorder %s1737_s11, %s1733_s10  ;;  %p95_p6 = scmp.eq.s32.totalorder %s1253_s19, 0 }
  0x1b   : > { %p1907_p5 = por %p89_p2, %p88_p1  ;;  %s2258_s22 = smov (%p42_p3, %s2256_s22), 0 }
  0x1c   : > { %2214 = sst [smem:[#allocation18_spill]] %s2258_s22  ;;  %s2260_s23 = smov (!%p42_p3, %s44_s23), %s1765_s17 }
  0x1d   : > { %p1914_p7 = por %p95_p6, %p94_p4  ;;  %s241_s28 = ssub.s32 %s1761_s16, %s2258_s22 }
  0x1e   : > { %p46_p8 = scmp.ge.s32.totalorder %s2260_s23, 2  ;;  %s245_s21 = sadd.s32 1, %s1729_s9 }
  0x1f   : > { %p255_p9 = scmp.ne.s32.totalorder %s1729_s9, %s1725_s30  ;;  %p256_p10 = scmp.eq.s32.totalorder %s1253_s19, 7 }
  0x20   : > { %s2262_s23 = smov (%p46_p8, %s2260_s23), 0  ;;  %p261_p12 = scmp.ne.s32.totalorder %s1725_s30, %s1721_s29 }
  0x21   : > { %2216 = sst [smem:[#allocation19_spill]] %s2262_s23  ;;  %p1925_p11 = por %p256_p10, %p255_p9 }
  0x22   : > { %s76_s8 = ssub.s32 %s1765_s17, %s2262_s23  ;;  %p262_p13 = scmp.eq.s32.totalorder %s1254_s20, 7 }
  0x23   : > { %s2217_s10 = scalar_select %p1925_p11, 1, 0 }
  0x24   : > { %s78_s22 = sor.u32 %s77_s25, %s76_s8  ;;  %s242_s16 = sor.u32 %s241_s28, %s76_s8 }
  0x25   : > { %2218 = sst [smem:[#allocation20_spill]] %s2217_s10  ;;  %p79_p0 = scmp.eq.s32.totalorder %s78_s22, 0 }
  0x26   : > { %p243_p1 = scmp.eq.s32.totalorder %s242_s16, 0  ;;  %p1933_p2 = por %p262_p13, %p261_p12 }
  0x27   : > { %s1938_s6 = scalar_select %p79_p0, %s1741_s12, %s81_s24  }
  0x28   : > { %s2219_s19 = scalar_select %p1933_p2, 1, 0 }
  0x29   : > { %2220 = sst [smem:[#allocation21_spill]] %s1938_s6  ;;  %p1449_p3 = scmp.lt.s32.totalorder %s1769_s18, 8 }
  0x2a   : > { %s1941_s5 = scalar_select %p243_p1, %s1729_s9, %s245_s21  }
  0x2b   : > { %s305_s10 = sand.u32 1, %s1741_s12   ;;  %s1258_s23 = sshll.u32 %s1765_s17, 1 }
  0x2c   : > { %s1257_s29 = sshll.u32 %s305_s10, 2  ;;  %s314_s20 = sadd.s32 %s1757_s15, %s1258_s23 }
  0x2d   : > { %s309_s25 = scalar_lea.vmem [#allocation7], %s1257_s29  ;;  %s1259_s28 = sshll.u32 %s314_s20, 6 }
  0x2e   : > { %s318_s8 = sshll.u32 %s309_s25, 4  ;;  %s2221_s1 = sld [smem:[#allocation22_spill]]  ;;  %s1947_s8 = int_to_ptr.vmem [resolvable:$true] %s318_s8 }
  0x2f   : > { %p1956_p4 = pnand %p1449_p3, %p1907_p5  ;;  %s306_s29 = scalar_lea.sflag [#allocation8], %s305_s10 }
  0x31   : > { %p1603_p10 = pneg %p1956_p4 }
  0x34   : > { %s1952_s4 = scalar_lea.hbm %s2221_s1, %s1259_s28  ;;  %s1606_s20 = scalar_lea.hbm %s2221_s1, 256 }
  0x35   : > { %s1601_s23 = scalar_lea.hbm %s1952_s4, 64  ;;  %p1607_p5 = scmp.lt.u32.totalorder %s1952_s4, %s2221_s1 }
  0x36   : > { %p1602_p9 = scmp.ne.s32.totalorder %s1952_s4, %s1601_s23  ;;  %p1608_p0 = scmp.lt.u32.totalorder %s1606_s20, %s1601_s23 }
  0x37   : > { %p1610_p3 = scmp.lt.u32.totalorder %s1601_s23, %s1952_s4 }
  0x38   : > { %p1604_p12 = pnand %p1603_p10, %p1602_p9  ;;  %p1609_p1 = por %p1608_p0, %p1607_p5 }
  0x3a   : > { %p1605_p13 = pneg %p1604_p12  ;;  %p1611_p6 = por %p1610_p3, %p1609_p1 }
  0x3c   : > { %p1612_p8 = pnand %p1611_p6, %p1605_p13 }
  0x3e   : > { %1615 = shalt.err (!%p1612_p8)
}
  0x3f   : > { %s1616_s10 = scalar_lea.vmem %s1947_s8, 64  ;;  %s1771_s16 = smov [#allocation7]  }
  0x40   : > { %p1617_p9 = scmp.ne.s32.totalorder %s1947_s8, %s1616_s10  ;;  %s1621_s22 = sshll.u32 %s1771_s16, 4  ;;  %s1622_s22 = int_to_ptr.vmem [resolvable:$false] %s1621_s22 }
  0x41   : > { %s1623_s24 = scalar_lea.vmem %s1622_s22, 128  ;;  %p1624_p11 = scmp.lt.s32.totalorder %s1947_s8, %s1622_s22 }
  0x42   : > { %p1619_p12 = pnand %p1617_p9, %p1603_p10  ;;  %p1625_p5 = scmp.lt.s32.totalorder %s1623_s24, %s1616_s10 }
  0x44   : > { %p1620_p2 = pneg %p1619_p12  ;;  %p1626_p0 = por %p1625_p5, %p1624_p11 }
  0x46   : > { %p1627_p1 = pnand %p1626_p0, %p1620_p2 }
  0x48   : > { %1630 = shalt.err (!%p1627_p1)
}
  0x49   : > { %1444 = dma.hbm_to_vmem [thread:$0]  (!%p1956_p4), %s1952_s4, 64, %s1947_s8, %s306_s29  }
  0x4a   : > { %p2223_p6 = scmp.lt.s32.totalorder %s1769_s18, 9  ;;  %p2224_p8 = scmp.ge.s32.totalorder %s1769_s18, 1 }
  0x4c   : > { %p338_p10 = pnand %p2224_p8, %p2223_p6 }
  0x4d   : > { %s343_s23 = sand.u32 (!%p338_p10), 1, %s1737_s11  }
  0x4e   : > { %341 = sbr.rel (%p338_p10) target bundleno = 1514 (0x5ea), region = 52  ;;  %s1992_s26 = sshll.u32 (!%p338_p10), %s343_s23, 2 }
  0x4f   : > { %s344_s20 = scalar_lea.sflag (!%p338_p10), [#allocation8], %s343_s23 }
  0x55   : > { %1712 = dma.done.wait (%p1914_p7), %s344_s20, 64  }
  0x56   : > { %1714 = vsyncadd (%p1914_p7), %s344_s20, 4294967232  ;;  %s2202_s4 = sand.u32 1, %s1725_s30   ;;  %p396_p11 = scmp.lt.s32.totalorder %s1753_s7, 1 }
  0x57   : > { %s2003_s8 = sshll.u32 %s2202_s4, 2  ;;  %p398_p2 = scmp.lt.s32.totalorder %s1749_s14, 1 }
  0x58   : > { %s397_s21 = scalar_select %p396_p11, %s1753_s7, 1 }
  0x59   : > { %s399_s29 = scalar_select %p398_p2, %s1749_s14, 1 }
  0x5a   : > { %s1263_s28 = sshll.u32 %s397_s21, 1  ;;  %s1265_s10 = sshll.u32 %s397_s21, 2 }
  0x5b   : > { %s401_s16 = sadd.s32 %s1263_s28, %s399_s29  ;;  %s407_s24 = scalar_lea.vmem %s2184_s2, %s1265_s10 }
  0x5c   : > { %s1264_s23 = sshll.u32 %s401_s16, 2  ;;  %s411_s1 = scalar_lea.vmem %s2185_s3, %s1265_s10 }
  0x5d   : > { %s403_s4 = scalar_lea.vmem %s2182_s0, %s1264_s23  ;;  %s395_s6 = scalar_lea.vmem [#allocation10], %s2003_s8 }
  0x5e   : > { %p1267_p7 = scmp.ne.s32.totalorder %s1745_s13, 0 }
  0x5f   : > { %v417_v0 = vld [vmem:[%s407_s24] sm:$0xf] (!%p1267_p7)  ;;  %v1772_v1 = vmov (!%p1267_p7), 0   ;;  %v1773_v2 = vmov (!%p1267_p7), 0.0   ;;  %vm1774_vm0 = vmmov (!%p1267_p7), 0   ;;  %vm429_vm1 = vcmask (!%p1267_p7), 1043456  }
  0x60   : > { %415 = sbr.rel (%p1267_p7) target bundleno = 441 (0x1b9), region = 60  ;;  %1563 = vset.pattern.permute.xlu0 (!%p1267_p7), %v1772_v1  ;;  %1337 = vmatprep.subr.mxu0 (!%p1267_p7), %v1773_v2  ;;  %505 = vst [vmem:[#allocation4] sm:$0x1] (!%p1267_p7), %v1773_v2  ;;  %506 = vst [vmem:[#allocation5] sm:$0xf] (!%p1267_p7), %v1773_v2  ;;  %s2225_s25 = sld [smem:[#allocation23_spill]] (!%p1267_p7) }
  0x61   : > { %420 = vperm.xlu0 (!%p1267_p7), %1563, %v417_v0   ;;  %1339 = vmatprep.mubr.msk.f32.mxu0 (!%p1267_p7), %vm1774_vm0, %v1773_v2  ;;  %v416_v3 = vld [vmem:[%s403_s4] sm:$0xf] (!%p1267_p7)  ;;  %vm425_vm2 = vcmask (!%p1267_p7), 31744   ;;  %v1775_v7 = vmov (!%p1267_p7), -inf  }
  0x62   : > { %504 = vst [vmem:[#allocation3] sm:$0x1] (!%p1267_p7), %v1775_v7 }
  0x66   : > { %v424_v6 = vld [vmem:[%s2225_s25] sm:$0xf] (!%p1267_p7) }
  0xe0   : > { %v421_v4 = vpop.permute.xlu0 %420 }
  0xe1   : > { %v423_v5 = vsub.f32 %v416_v3, %v421_v4 }
  0xe3   : > { %1338 = vmatpush3.msk.msra.mxu0 %vm429_vm1, %v423_v5 }
  0xe4   : > { %1340 = vmatmul.mubr.msk.f32.vlgmr.msra.gmra.mrb[0].mxu0 %vm425_vm2, %v424_v6 }
 0x1b7   : > { %v499_v8 = vpop.f32.mrb[0].mxu0 }
 0x1b8   : > { %503 = vst [vmem:[#allocation2] sm:$0xf] %v499_v8  ;;  %v1341_v9 = vpop.f32.mrb[1].mxu0 }
 0x1b9 PF: > { %v508_v10 = vld [vmem:[%s411_s1] sm:$0xf]  ;;  %v1776_v11 = vmov 0   ;;  %s2226_s4 = scalar_lea.vmem [#allocation7], %s1992_s26  ;;  %v1777_v13 = vmov 0.0   ;;  %vm520_vm3 = vcmask 1043456   ;;  %v927_v9 = vlaneseq }
 0x1ba   : > { %1564 = vset.pattern.permute.xlu0 %v1776_v11  ;;  %v507_v12 = vld [vmem:[%s2226_s4] sm:$0xf]  ;;  %1342 = vmatprep.subr.mxu0 %v1777_v13  ;;  %vm1778_vm4 = vmmov 0   ;;  %s2227_s29 = sld [smem:[#allocation24_spill]]  ;;  %vm516_vm5 = vcmask 31744   ;;  %s2228_s10 = sld [smem:[#allocation25_spill]] }
 0x1bb   : > { %511 = vperm.xlu0 %1564, %v508_v10   ;;  %1347 = vmatprep.subr.mxu1 %v1777_v13  ;;  %v1779_v37 = vmov 0.0|0.0   ;;  %p1291_p4 = scmp.ne.s32.totalorder %s1745_s13, 1 }
 0x1bc   : > { %1344 = vmatprep.mubr.msk.f32.mxu0 %vm1778_vm4, %v1777_v13  ;;  %1348 = vmatpush3.msk.msra.mxu1 %vm520_vm3, %v507_v12  ;;  %s1090_s16 = sld [smem:[#allocation6]] (!%p1291_p4) }
 0x1bd   : > { %1349 = vmatprep.mubr.msk.f32.mxu1 %vm1778_vm4, %v1777_v13  ;;  %1413 = vmatprep.subr.bf16.mxu1 %v1779_v37 }
 0x1bf   : > { %v671_v19 = vld [vmem:[#allocation2] sm:$0xf] }
 0x1c0   : > { %v515_v16 = vld [vmem:[%s2227_s29] sm:$0xf] }
 0x1c1   : > { %v594_v20 = vld [vmem:[%s2228_s10] sm:$0xf] }
 0x1c2   : > { %1350 = vmatmul.mubr.msk.f32.vlgmr.msra.gmra.mrb[0].mxu1 %vm516_vm5, %v594_v20 }
 0x1c3   : > { %1410 = vmatprep.mubr.msk.f32.mxu1 %vm1778_vm4, %v1777_v13 }
 0x23a   : > { %v512_v14 = vpop.permute.xlu0 %511 }
 0x23b   : > { %v514_v15 = vsub.f32 %v507_v12, %v512_v14  ;;  %v928_v12 = vshrl.u32 %v927_v9, 7  ;;  %v900_v14 = vld [vmem:[#allocation3] sm:$0x1] }
 0x23d   : > { %1343 = vmatpush3.msk.msra.mxu0 %vm520_vm3, %v514_v15 }
 0x23e   : > { %1345 = vmatmul.mubr.msk.f32.vlgmr.msra.gmra.mrb[0].mxu0 %vm516_vm5, %v515_v16  ;;  %1352 = vmatprep.subr.msk.mxu0 %vm520_vm3, %v671_v19  ;;  %v2082_v16 = vsub.s32 0, %v928_v12 }
 0x23f   : > { %1353 = vmatpush3.msk.msra.mxu0 %vm520_vm3, %v671_v19 }
 0x295   : > { %v2060_v42 = vpop.f32.mrb[0].mxu1 }
 0x296   : > { %v1351_v43 = vpop.f32.mrb[1].mxu1 }
 0x311   : > { %v590_v17 = vpop.f32.mrb[0].mxu0 }
 0x312   : > { %672 = vxpose.xlu0.b32.start.end [1/1] (short) %v590_v17, 128  ;;  %v1346_v18 = vpop.f32.mrb[1].mxu0 }
 0x392   : > { %v688_v21 = vpop.trf.xlu0 }
 0x393   : > { %1354 = vmatprep.mubr.msk.f32.mxu0 %vm516_vm5, %v688_v21 }
 0x396   : > { %v689_v22 = vpop.trf.xlu0 }
 0x397   : > { %1355 = vmatmul.mubr.msk.f32.vlgmr.msra.gmra.mrb[2].mxu0 %vm516_vm5, %v689_v22 }
 0x39a   : > { %v690_v23 = vpop.trf.xlu0 }
 0x39b   : > { %1357 = vmatprep.mubr.msk.f32.mxu0 %vm516_vm5, %v690_v23 }
 0x39e   : > { %v691_v24 = vpop.trf.xlu0 }
 0x39f   : > { %1358 = vmatmul.mubr.msk.f32.gmra.mrb[4].mxu0 %vm516_vm5, %v691_v24 }
 0x3a2   : > { %v692_v25 = vpop.trf.xlu0 }
 0x3a3   : > { %1360 = vmatprep.mubr.msk.f32.mxu0 %vm516_vm5, %v692_v25 }
 0x3a6   : > { %v693_v26 = vpop.trf.xlu0 }
 0x3a7   : > { %1361 = vmatmul.mubr.msk.f32.gmra.mrb[6].mxu0 %vm516_vm5, %v693_v26 }
 0x3aa   : > { %v694_v27 = vpop.trf.xlu0 }
 0x3ab   : > { %1363 = vmatprep.mubr.msk.f32.mxu0 %vm516_vm5, %v694_v27 }
 0x3ae   : > { %v695_v28 = vpop.trf.xlu0 }
 0x3af   : > { %1364 = vmatmul.mubr.msk.f32.gmra.mrb[8].mxu0 %vm516_vm5, %v695_v28 }
 0x3b2   : > { %v696_v29 = vpop.trf.xlu0 }
 0x3b3   : > { %1366 = vmatprep.mubr.msk.f32.mxu0 %vm516_vm5, %v696_v29 }
 0x3b6   : > { %v697_v30 = vpop.trf.xlu0 }
 0x3b7   : > { %1367 = vmatmul.mubr.msk.f32.gmra.mrb[10].mxu0 %vm516_vm5, %v697_v30 }
 0x3ba   : > { %v698_v31 = vpop.trf.xlu0 }
 0x3bb   : > { %1369 = vmatprep.mubr.msk.f32.mxu0 %vm516_vm5, %v698_v31 }
 0x3be   : > { %v699_v32 = vpop.trf.xlu0 }
 0x3bf   : > { %1370 = vmatmul.mubr.msk.f32.gmra.mrb[12].mxu0 %vm516_vm5, %v699_v32 }
 0x3c2   : > { %v700_v33 = vpop.trf.xlu0 }
 0x3c3   : > { %1372 = vmatprep.mubr.msk.f32.mxu0 %vm516_vm5, %v700_v33 }
 0x3c6   : > { %v701_v34 = vpop.trf.xlu0 }
 0x3c7   : > { %1373 = vmatmul.mubr.msk.f32.gmra.mrb[14].mxu0 %vm516_vm5, %v701_v34 }
 0x3ca   : > { %v702_v35 = vpop.trf.xlu0 }
 0x3cb   : > { %1375 = vmatprep.mubr.msk.f32.mxu0 %vm516_vm5, %v702_v35 }
 0x3ce   : > { %v703_v36 = vpop.trf.xlu0 }
 0x3cf   : > { %1376 = vmatmul.mubr.msk.f32.gmra.mrb[16].mxu0 %vm516_vm5, %v703_v36 }
 0x46a   : > { %v2056_v38 = vpop.f32.mrb[2].mxu0 }
 0x46b   : > { %v821_v39 = vpop.f32.mrb[3].mxu0 }
 0x472   : > { %v2058_v40 = vpop.f32.mrb[4].mxu0 }
 0x473   : > { %v831_v41 = vpop.f32.mrb[5].mxu0 }
 0x47a   : > { %v2062_v44 = vpop.f32.mrb[6].mxu0 }
 0x47b   : > { %v902_v45 = vmax.f32 %v2056_v38, %v2062_v44  ;;  %v841_v46 = vpop.f32.mrb[7].mxu0 }
 0x47c   : > { %v901_v47 = vmax.f32 %v821_v39, %v841_v46 }
 0x482   : > { %v2066_v48 = vpop.f32.mrb[8].mxu0 }
 0x483   : > { %v904_v49 = vmax.f32 %v2058_v40, %v2066_v48  ;;  %v851_v50 = vpop.f32.mrb[9].mxu0 }
 0x484   : > { %v903_v51 = vmax.f32 %v831_v41, %v851_v50 }
 0x48a   : > { %v2070_v52 = vpop.f32.mrb[10].mxu0 }
 0x48b   : > { %v906_v53 = vmax.f32 %v902_v45, %v2070_v52  ;;  %v861_v54 = vpop.f32.mrb[11].mxu0 }
 0x48c   : > { %v905_v55 = vmax.f32 %v901_v47, %v861_v54 }
 0x492   : > { %v2073_v56 = vpop.f32.mrb[12].mxu0 }
 0x493   : > { %v908_v57 = vmax.f32 %v904_v49, %v2073_v56  ;;  %v871_v58 = vpop.f32.mrb[13].mxu0 }
 0x494   : > { %v907_v59 = vmax.f32 %v903_v51, %v871_v58 }
 0x49a   : > { %v2076_v60 = vpop.f32.mrb[14].mxu0 }
 0x49b   : > { %v910_v61 = vmax.f32 %v906_v53, %v2076_v60  ;;  %v881_v62 = vpop.f32.mrb[15].mxu0 }
 0x49c   : > { %v909_v63 = vmax.f32 %v905_v55, %v881_v62 }
 0x49e   : > { %v913_v0 = vmax.f32 %v909_v63, %v910_v61 }
 0x4a2   : > { %v2079_v1 = vpop.f32.mrb[16].mxu0 }
 0x4a3   : > { %v912_v2 = vmax.f32 %v908_v57, %v2079_v1  ;;  %v891_v3 = vpop.f32.mrb[17].mxu0 }
 0x4a4   : > { %v911_v4 = vmax.f32 %v907_v59, %v891_v3 }
 0x4a6   : > { %v914_v5 = vmax.f32 %v911_v4, %v912_v2 }
 0x4a8   : > { %v915_v6 = vmax.f32 %v913_v0, %v914_v5 }
 0x4aa   : > { %v916_v7 = vrot.slane %v915_v6, 4 }
 0x4ac   : > { %v917_v8 = vmax.f32 %v915_v6, %v916_v7 }
 0x4ae   : > { %v918_v10 = vrot.slane %v917_v8, 2 }
 0x4b0   : > { %v919_v11 = vmax.f32 %v917_v8, %v918_v10 }
 0x4b2   : > { %v920_v13 = vrot.slane %v919_v11, 1 }
 0x4b4   : > { %v921_v15 = vmax.f32 %v919_v11, %v920_v13 }
 0x4b6   : > { %v922_v17 = vmax.f32 %v900_v14, %v921_v15 }
 0x4b8   : > { %v930_v18 = vrot.slane %v922_v17, %v2082_v16  ;;  %1085 = vst [vmem:[#allocation3] sm:$0x1] %v922_v17 }
 0x4ba   : > { %v932_v19 = vsub.f32 %v821_v39, %v930_v18  ;;  %v933_v20 = vsub.f32 %v2056_v38, %v930_v18  ;;  %v934_v21 = vsub.f32 %v831_v41, %v930_v18  ;;  %v935_v22 = vsub.f32 %v2058_v40, %v930_v18 }
 0x4bb   : > { %v936_v23 = vsub.f32 %v841_v46, %v930_v18  ;;  %v937_v24 = vsub.f32 %v2062_v44, %v930_v18  ;;  %v938_v25 = vsub.f32 %v851_v50, %v930_v18  ;;  %v939_v26 = vsub.f32 %v2066_v48, %v930_v18 }
 0x4bc   : > { %v940_v27 = vsub.f32 %v861_v54, %v930_v18  ;;  %v941_v28 = vsub.f32 %v2070_v52, %v930_v18  ;;  %v942_v29 = vsub.f32 %v871_v58, %v930_v18  ;;  %v943_v30 = vsub.f32 %v2073_v56, %v930_v18 }
 0x4bd   : > { %v944_v31 = vsub.f32 %v881_v62, %v930_v18  ;;  %v945_v32 = vsub.f32 %v2076_v60, %v930_v18  ;;  %v946_v33 = vsub.f32 %v891_v3, %v930_v18  ;;  %v947_v34 = vsub.f32 %v2079_v1, %v930_v18 }
 0x4be   : > { %v948_v35 = vmul.f32 1.442695, %v932_v19  ;;  %v950_v36 = vmul.f32 1.442695, %v933_v20  ;;  %v952_v38 = vmul.f32 1.442695, %v934_v21  ;;  %v923_v50 = vsub.f32 %v900_v14, %v922_v17 }
 0x4bf   : > { %v954_v39 = vmul.f32 1.442695, %v935_v22  ;;  %v956_v40 = vmul.f32 1.442695, %v936_v23  ;;  %v958_v41 = vmul.f32 1.442695, %v937_v24 }
 0x4c0   : > { %1565 = vpow2.f32 %v948_v35  ;;  %v960_v43 = vmul.f32 1.442695, %v938_v25  ;;  %v962_v44 = vmul.f32 1.442695, %v939_v26  ;;  %v964_v45 = vmul.f32 1.442695, %v940_v27 }
 0x4c1   : > { %1567 = vpow2.f32 %v950_v36  ;;  %v966_v46 = vmul.f32 1.442695, %v941_v28  ;;  %v968_v47 = vmul.f32 1.442695, %v942_v29  ;;  %v970_v48 = vmul.f32 1.442695, %v943_v30 }
 0x4c2   : > { %1569 = vpow2.f32 %v952_v38  ;;  %v972_v49 = vmul.f32 1.442695, %v944_v31  ;;  %v974_v51 = vmul.f32 1.442695, %v945_v32  ;;  %v976_v53 = vmul.f32 1.442695, %v946_v33 }
 0x4c3   : > { %1571 = vpow2.f32 %v954_v39  ;;  %v978_v55 = vmul.f32 1.442695, %v947_v34  ;;  %v924_v59 = vmul.f32 1.442695, %v923_v50  ;;  %v980_v38 = vld [vmem:[#allocation4] sm:$0x1] }
 0x4c4   : > { %1573 = vpow2.f32 %v956_v40 }
 0x4c5   : > { %1575 = vpow2.f32 %v958_v41 }
 0x4c6   : > { %1577 = vpow2.f32 %v960_v43 }
 0x4c7   : > { %1579 = vpow2.f32 %v962_v44  ;;  %v1005_v44 = vld [vmem:[#allocation5] sm:$0xf] }
 0x4c8   : > { %1581 = vpow2.f32 %v964_v45 }
 0x4c9   : > { %1583 = vpow2.f32 %v966_v46 }
 0x4ca   : > { %v1566_v52 = vpop.eup %1565  ;;  %1585 = vpow2.f32 %v968_v47 }
 0x4cb   : > { %v1568_v54 = vpop.eup %1567  ;;  %1587 = vpow2.f32 %v970_v48 }
 0x4cc   : > { %v1570_v56 = vpop.eup %1569  ;;  %1589 = vpow2.f32 %v972_v49  ;;  %v982_v57 = vadd.f32 %v1568_v54, %v1566_v52  ;;  %v1414_v58 = vpack.c.bf16 %v1568_v54, %v1566_v52 }
 0x4cd   : > { %v1572_v60 = vpop.eup %1571  ;;  %1591 = vpow2.f32 %v974_v51 }
 0x4ce   : > { %v1574_v61 = vpop.eup %1573  ;;  %1593 = vpow2.f32 %v976_v53  ;;  %v983_v62 = vadd.f32 %v1570_v56, %v982_v57  ;;  %1415 = vmatpush3.bf16.msra.mxu1 %v1414_v58  ;;  %v1417_v63 = vpack.c.bf16 %v1572_v60, %v1570_v56 }
 0x4cf   : > { %v1576_v0 = vpop.eup %1575  ;;  %1595 = vpow2.f32 %v978_v55  ;;  %1416 = vmatprep.subr.bf16.mxu1 %v1779_v37 }
 0x4d0   : > { %v1578_v1 = vpop.eup %1577  ;;  %v984_v2 = vadd.f32 %v1572_v60, %v983_v62  ;;  %v1420_v3 = vpack.c.bf16 %v1576_v0, %v1574_v61  ;;  %1597 = vpow2.f32 %v924_v59 }
 0x4d1   : > { %v1580_v4 = vpop.eup %1579 }
 0x4d2   : > { %v1582_v5 = vpop.eup %1581  ;;  %v985_v6 = vadd.f32 %v1574_v61, %v984_v2  ;;  %1418 = vmatpush3.bf16.msra.mxu1 %v1417_v63  ;;  %v1423_v7 = vpack.c.bf16 %v1580_v4, %v1578_v1 }
 0x4d3   : > { %v1584_v8 = vpop.eup %1583  ;;  %1419 = vmatprep.subr.bf16.mxu1 %v1779_v37 }
 0x4d4   : > { %v1586_v9 = vpop.eup %1585  ;;  %v986_v10 = vadd.f32 %v1576_v0, %v985_v6  ;;  %v1426_v11 = vpack.c.bf16 %v1584_v8, %v1582_v5 }
 0x4d5   : > { %v1588_v12 = vpop.eup %1587 }
 0x4d6   : > { %v1590_v13 = vpop.eup %1589  ;;  %v987_v14 = vadd.f32 %v1578_v1, %v986_v10  ;;  %1421 = vmatpush3.bf16.msra.mxu1 %v1420_v3  ;;  %v1429_v15 = vpack.c.bf16 %v1588_v12, %v1586_v9 }
 0x4d7   : > { %v1592_v17 = vpop.eup %1591  ;;  %1422 = vmatprep.subr.bf16.mxu1 %v1779_v37 }
 0x4d8   : > { %v1594_v18 = vpop.eup %1593  ;;  %v988_v19 = vadd.f32 %v1580_v4, %v987_v14  ;;  %v1432_v20 = vpack.c.bf16 %v1592_v17, %v1590_v13 }
 0x4d9   : > { %v1596_v21 = vpop.eup %1595 }
 0x4da   : > { %v1598_v22 = vpop.eup %1597  ;;  %v989_v23 = vadd.f32 %v1582_v5, %v988_v19  ;;  %1424 = vmatpush3.bf16.msra.mxu1 %v1423_v7  ;;  %v1435_v24 = vpack.c.bf16 %v1596_v21, %v1594_v18 }
 0x4db   : > { %1425 = vmatprep.subr.bf16.mxu1 %v1779_v37  ;;  %v1010_v25 = vrot.slane %v1598_v22, %v2082_v16  ;;  %v981_v41 = vmul.f32 %v1598_v22, %v980_v38 }
 0x4dc   : > { %v990_v26 = vadd.f32 %v1584_v8, %v989_v23 }
 0x4dd   : > { %v1012_v45 = vmul.f32 %v1010_v25, %v1005_v44 }
 0x4de   : > { %v991_v27 = vadd.f32 %v1586_v9, %v990_v26  ;;  %1427 = vmatpush3.bf16.msra.mxu1 %v1426_v11 }
 0x4df   : > { %1428 = vmatprep.subr.bf16.mxu1 %v1779_v37 }
 0x4e0   : > { %v992_v28 = vadd.f32 %v1588_v12, %v991_v27 }
 0x4e2   : > { %v993_v29 = vadd.f32 %v1590_v13, %v992_v28  ;;  %1430 = vmatpush3.bf16.msra.mxu1 %v1429_v15 }
 0x4e3   : > { %1431 = vmatprep.subr.bf16.mxu1 %v1779_v37 }
 0x4e4   : > { %v994_v30 = vadd.f32 %v1592_v17, %v993_v29 }
 0x4e6   : > { %v995_v31 = vadd.f32 %v1594_v18, %v994_v30  ;;  %1433 = vmatpush3.bf16.msra.mxu1 %v1432_v20 }
 0x4e7   : > { %1434 = vmatprep.subr.bf16.mxu1 %v1779_v37 }
 0x4e8   : > { %v996_v32 = vadd.f32 %v1596_v21, %v995_v31 }
 0x4ea   : > { %v997_v33 = vrot.slane %v996_v32, 4  ;;  %1436 = vmatpush3.bf16.msra.mxu1 %v1435_v24 }
 0x4ec   : > { %v998_v34 = vadd.f32 %v997_v33, %v996_v32 }
 0x4ed   : > { %1411 = vmatmul.mubr.f32.vlgmr.msra.gmra.mrb[2].mxu1 %v2060_v42  ;;  %v1093_v42 = vstv (!%p1291_p4), %s1090_s16 }
 0x4ee   : > { %v999_v35 = vrot.slane %v998_v34, 2 }
 0x4f0   : > { %v1000_v36 = vadd.f32 %v999_v35, %v998_v34 }
 0x4f2   : > { %v1001_v39 = vrot.slane %v1000_v36, 1 }
 0x4f4   : > { %v1002_v40 = vadd.f32 %v1001_v39, %v1000_v36 }
 0x4f6   : > { %v1003_v43 = vadd.f32 %v1002_v40, %v981_v41 }
 0x4f8   : > { %1004 = vst [vmem:[#allocation4] sm:$0x1] %v1003_v43 }
 0x4ff   : > { %v1091_v37 = vld [vmem:[#allocation4] sm:$0x1] (!%p1291_p4) }
 0x500   : > { %1599 = vrcp.f32 (!%p1291_p4), %v1091_v37 }
 0x50a   : > { %v1600_v49 = vpop.eup (!%p1291_p4), %1599 }
 0x50b   : > { %v1094_v50 = vmul.f32 (!%p1291_p4), %v1600_v49, %v1093_v42 }
 0x50d   : > { %v1100_v52 = vrot.slane (!%p1291_p4), %v1094_v50, %v2082_v16 }
 0x5bd   : > { %1089 = sbr.rel (%p1291_p4) target bundleno = 1486 (0x5ce), region = 64 }
 0x5c0   : > { %v1079_v46 = vpop.f32.mrb[2].mxu1 }
 0x5c1   : > { %v1083_v47 = vadd.f32 %v1079_v46, %v1012_v45  ;;  %v1412_v48 = vpop.f32.mrb[3].mxu1 }
 0x5c3   : > { %1084 = vst [vmem:[#allocation5] sm:$0xf] %v1083_v47 }
 0x5ca   : > { %v1095_v51 = vld [vmem:[#allocation5] sm:$0xf] }
 0x5cb   : > { %v1102_v53 = vmul.f32 %v1100_v52, %v1095_v51 }
 0x5cd   : > { %1103 = vst [vmem:[%s395_s6] sm:$0xf] %v1102_v53 }
 0x5ce PF: > { %s2229_s13 = sld [smem:[#allocation20_spill]]  ;;  %s1293_s27 = sshll.u32 %s1753_s7, 1 }
 0x5cf   : > { %s1116_s22 = sadd.s32 %s1749_s14, %s1293_s27  ;;  %s1120_s24 = sshll.u32 %s395_s6, 4  ;;  %s2110_s24 = int_to_ptr.vmem [resolvable:$true] %s1120_s24 }
 0x5d0   : > { %s1294_s23 = sshll.u32 %s1116_s22, 6  ;;  %s2230_s17 = sld [smem:[#allocation26_spill]] }
 0x5d1   : > { %s2232_s1 = sand.u32 1, %s1725_s30   ;;  %s1631_s29 = scalar_lea.vmem %s2110_s24, 64 }
 0x5d2   : > { %s1105_s21 = scalar_lea.sflag [#allocation9], %s2232_s1  ;;  %p1632_p13 = scmp.ne.s32.totalorder %s2110_s24, %s1631_s29 }
 0x5d3   : > { %s1780_s14 = smov [#allocation10]  }
 0x5d4   : > { %p2233_p3 = scmp.ne.s32.totalorder %s2229_s13, 0  ;;  %s1635_s7 = sshll.u32 %s1780_s14, 4  ;;  %s1636_s7 = int_to_ptr.vmem [resolvable:$false] %s1635_s7 }
 0x5d5   : > { %s1637_s6 = scalar_lea.vmem %s1636_s7, 128  ;;  %p1638_p5 = scmp.lt.s32.totalorder %s2110_s24, %s1636_s7 }
 0x5d6   : > { %s2231_s25 = smov %s2230_s17  ;;  %s1118_s4 = scalar_lea.hbm %s2230_s17, %s1294_s23 }
 0x5d7   : > { %p1633_p9 = pnand %p1632_p13, %p2233_p3  ;;  %p1639_p0 = scmp.lt.s32.totalorder %s1637_s6, %s1631_s29 }
 0x5d9   : > { %p1634_p12 = pneg %p1633_p9  ;;  %p1640_p1 = por %p1639_p0, %p1638_p5 }
 0x5db   : > { %p1641_p6 = pnand %p1640_p1, %p1634_p12 }
 0x5dd   : > { %1644 = shalt.err (!%p1641_p6)
}
 0x5de   : > { %s1645_s8 = scalar_lea.hbm %s1118_s4, 64  ;;  %s1649_s10 = scalar_lea.hbm %s2231_s25, 256 }
 0x5df   : > { %p1646_p8 = scmp.ne.s32.totalorder %s1118_s4, %s1645_s8  ;;  %p1650_p2 = scmp.lt.u32.totalorder %s1118_s4, %s2231_s25 }
 0x5e0   : > { %p1651_p7 = scmp.lt.u32.totalorder %s1649_s10, %s1645_s8  ;;  %p1653_p13 = scmp.lt.u32.totalorder %s1645_s8, %s1118_s4 }
 0x5e1   : > { %p1647_p10 = pnand %p1646_p8, %p2233_p3 }
 0x5e2   : > { %p1652_p4 = por %p1651_p7, %p1650_p2 }
 0x5e3   : > { %p1648_p11 = pneg %p1647_p10 }
 0x5e4   : > { %p1654_p9 = por %p1653_p13, %p1652_p4 }
 0x5e6   : > { %p1655_p12 = pnand %p1654_p9, %p1648_p11 }
 0x5e8   : > { %1658 = shalt.err (!%p1655_p12)
}
 0x5e9   : > { %1439 = dma.vmem_to_hbm [thread:$0]  (%p2233_p3), %s2110_s24, 64, %s1118_s4, %s1105_s21  }
 0x5ea PF: > { %s2234_s22 = sld [smem:[#allocation13_spill]]  ;;  %p1450_p5 = scmp.ge.s32.totalorder %s1769_s18, 2 }
 0x5eb   : > { %p2235_p0 = scmp.ne.s32.totalorder %s2219_s19, 0 }
 0x5ed   : > { %p1446_p1 = pnand %p1450_p5, %p2235_p0 }
 0x5f0   : > { %s1132_s23 = sand.u32 1, %s2234_s22  }
 0x5f1   : > { %s1133_s20 = scalar_lea.sflag [#allocation9], %s1132_s23 }
 0x5f2   : > { %1716 = dma.done.wait (!%p1446_p1), %s1133_s20, 64  }
 0x5f3   : > { %1718 = vsyncadd (!%p1446_p1), %s1133_s20, 4294967232  ;;  %s25_s18 = sadd.s32 1, %s1769_s18   ;;  %s2237_s13 = sld [smem:[#allocation21_spill]] }
 0x5f4   : > { %p2138_p6 = scmp.ge.s32.totalorder %s25_s18, 10   ;;  %s2238_s24 = sld [smem:[#allocation14_spill]] }
 0x5f5   : > { %s2239_s14 = sld [smem:[#allocation15_spill]]  ;;  %s2240_s7 = sld [smem:[#allocation16_spill]] }
 0x5f6   : > { %s2241_s19 = sld [smem:[#allocation17_spill]]  ;;  %s2242_s16 = sld [smem:[#allocation18_spill]] }
 0x5f7   : > { %s2243_s17 = sld [smem:[#allocation19_spill]]  ;;  %s2245_s29 = smov %s1725_s30 }
 0x5f8   : > { %s2246_s30 = smov %s1729_s9  ;;  %s2247_s9 = smov %s1941_s5 }
 0x5f9   : > { %s2248_s10 = smov %s1737_s11  ;;  %s2249_s11 = smov %s1741_s12 }
 0x5fa   : > { %s2250_s12 = smov %s2237_s13  ;;  %s2251_s13 = smov %s2238_s24 }
 0x5fb   :  { %24 = sbr.rel (!%p2138_p6) target bundleno = 17 (0x11), region = 114 }
 0x5fc   : > { %s2252_s15 = smov %s2241_s19 }
 0x602   :  { %1138 = vsyncpa [#allocation8], 1 }
 0x603   :  { %1140 = vsyncpa [#allocation8 + $0x1], 1 }
 0x604   :  { %1141 = vsyncpa [#allocation9], 1 }
 0x605   :  { %1143 = vsyncpa [#allocation9 + $0x1], 1 }

</bundles_post_ra>
